<compile_context>
chip_gen: v5e
topology: v5e:2x2
jax: 0.10.0
libtpu: 0.0.40
codegen_flags: <defaults>
</compile_context>

<pallas_src>
import jax
import jax.numpy as jnp
from jax.experimental import pallas as pl
from jax.experimental.pallas import tpu as pltpu  # noqa: F401  (TPU backend)

# ---- static problem sizes (small, consistent with the module) ---------------
N, CIN, H, W = 2, 4, 16, 16
CF = 32            # perception feature channels
K = 3              # conv kernel size
HW = H * W
NHW = N * HW       # 512  -> lane axis (multiple of 128)
KC = K * K * CIN   # im2col contraction dim = 36
KC1 = KC + 1       # + ones row for folded conv bias = 37
KCP = 40           # contraction dim padded to a multiple of 8 sublanes
NOUT = 2           # grasp + throw heads
NOUTP = 8          # head rows padded to one full sublane tile

# epsilon-greedy schedule constants (module defaults)
EPS_START = 0.5
EPS_END = 0.1
TOTAL_EPISODES = 10000
TAU = 0.2 * TOTAL_EPISODES


# ---- Pallas kernel -----------------------------------------------------------
def _agent_kernel(xcolT_ref, wconvT_ref, wheadT_ref, bheadT_ref, out_ref):
    """Single-shot fused perception + grasp/throw heads.

    xcolT_ref : (KCP, N*HW) = (40, 512)  im2col patches^T + ones row + zero pad
    wconvT_ref: (CF, KCP)   = (32, 40)   [W_conv^T | b_conv | 0]  (3x3 conv)
    wheadT_ref: (8, CF)     = (8, 32)    row 0 grasp head, row 1 throw head, rest 0
    bheadT_ref: (8, 1)                   head biases (rows >= 2 are 0)
    out_ref   : (8, N*HW)   = (8, 512)   lane-dense [grasp; throw; 0...] slab
    """
    # perception module: 3x3 conv (+ folded bias) as one MXU matmul, then ReLU
    feat = jnp.maximum(
        jnp.dot(wconvT_ref[...], xcolT_ref[...],
                preferred_element_type=jnp.float32),
        0.0)                                                     # (CF, N*HW)
    # grasping + throwing 1x1 heads: one MXU matmul + tiny broadcast bias add
    out = jnp.dot(wheadT_ref[...], feat,
                  preferred_element_type=jnp.float32) + bheadT_ref[...]
    out_ref[...] = out.astype(out_ref.dtype)                     # (8, N*HW)


# ---- wrappers ----------------------------------------------------------------
@jax.jit
def base_agent_forward(x_nchw, w_conv, b_conv, w_head, b_head):
    """x_nchw: (N, CIN, H, W) float32 -> (grasp_map, throw_map) each (N, 1, H, W)."""
    # glue: NCHW -> NHWC, pad, im2col, transpose so N*HW is the lane axis
    x = jnp.transpose(x_nchw, (0, 2, 3, 1))                      # (N, H, W, CIN)
    xp = jnp.pad(x, ((0, 0), (1, 1), (1, 1), (0, 0)))            # (N, H+2, W+2, CIN)
    cols = [xp[:, kh:kh + H, kw:kw + W, :]
            for kh in range(K) for kw in range(K)]               # 9 x (N, H, W, CIN)
    x_col = jnp.concatenate(cols, axis=-1).reshape(NHW, KC)      # (N*HW, 9*CIN)
    x_colT = jnp.concatenate(
        [x_col.T,
         jnp.ones((1, NHW), jnp.float32),                        # folded conv bias
         jnp.zeros((KCP - KC1, NHW), jnp.float32)], axis=0)      # (KCP, N*HW)

    # [W_conv^T | b_conv | 0]: HWIO flatten, contraction dim padded to KCP
    w_convT = jnp.concatenate(
        [w_conv.reshape(KC, CF).T,
         b_conv.reshape(CF, 1),
         jnp.zeros((CF, KCP - KC1), jnp.float32)], axis=1)       # (CF, KCP)

    # head rows padded to one full 8-sublane tile (rows >= NOUT are zero)
    w_headT = jnp.zeros((NOUTP, CF), jnp.float32).at[:NOUT].set(w_head.T)
    b_headT = jnp.zeros((NOUTP, 1), jnp.float32).at[:NOUT, 0].set(b_head)

    out = pl.pallas_call(
        _agent_kernel,
        out_shape=jax.ShapeDtypeStruct((NOUTP, NHW), jnp.float32),
    )(x_colT, w_convT, w_headT, b_headT)

    # back to PyTorch-style NCHW maps (free layout plumbing)
    grasp = out[0].reshape(N, 1, H, W)
    throw = out[1].reshape(N, 1, H, W)
    return grasp, throw


def update_epsilon(episode_num):
    # Plain JAX: a pallas_call for a single scalar exp is pure launch overhead.
    ep = jnp.float32(episode_num)
    return EPS_END + (EPS_START - EPS_END) * jnp.exp(-ep / TAU)


# ---- deterministic parameter init & run -------------------------------------
if __name__ == "__main__":
    key = jax.random.PRNGKey(0)
    k_x, k_wc, k_bc, k_wh, k_bh = jax.random.split(key, 5)

    # synthetic observation (PyTorch NCHW convention)
    x = jax.random.normal(k_x, (N, CIN, H, W), dtype=jnp.float32)

    # perception conv weights in HWIO: (3, 3, CIN, CF)
    w_conv = 0.1 * jax.random.normal(k_wc, (K, K, CIN, CF), dtype=jnp.float32)
    b_conv = 0.01 * jax.random.normal(k_bc, (CF,), dtype=jnp.float32)
    # grasping + throwing 1x1 heads stacked: (CF, 2)
    w_head = 0.1 * jax.random.normal(k_wh, (CF, NOUT), dtype=jnp.float32)
    b_head = 0.01 * jax.random.normal(k_bh, (NOUT,), dtype=jnp.float32)

    grasp_map, throw_map = base_agent_forward(x, w_conv, b_conv, w_head, b_head)
    grasp_map, throw_map = jax.block_until_ready((grasp_map, throw_map))

    # pure-JAX reference check of the kernel's math
    xn = jnp.transpose(x, (0, 2, 3, 1))
    xp = jnp.pad(xn, ((0, 0), (1, 1), (1, 1), (0, 0)))
    cols = [xp[:, kh:kh + H, kw:kw + W, :] for kh in range(K) for kw in range(K)]
    x_col = jnp.concatenate(cols, axis=-1).reshape(N, HW, KC)
    feat = jnp.maximum(jnp.einsum("nij,jk->nik", x_col, w_conv.reshape(KC, CF))
                       + b_conv, 0.0)
    ref = jnp.einsum("nik,kt->nit", feat, w_head) + b_head
    ref_grasp = ref[:, :, 0].reshape(N, 1, H, W)
    ref_throw = ref[:, :, 1].reshape(N, 1, H, W)
    assert jnp.allclose(grasp_map, ref_grasp, atol=1e-4, rtol=1e-4)
    assert jnp.allclose(throw_map, ref_throw, atol=1e-4, rtol=1e-4)

    eps = jax.block_until_ready(update_epsilon(1000))
    eps_ref = EPS_END + (EPS_START - EPS_END) * jnp.exp(jnp.float32(-1000.0 / TAU))
    assert jnp.allclose(eps, eps_ref, atol=1e-5)

    print("KERNEL_OK")
</pallas_src>

<mosaic_0001>
module attributes {stable_mosaic.version = 11 : i64} {
  func.func @_agent_kernel(%arg0: memref<40x512xf32, #tpu.memory_space<vmem>>, %arg1: memref<32x40xf32, #tpu.memory_space<vmem>>, %arg2: memref<8x32xf32, #tpu.memory_space<vmem>>, %arg3: memref<8x1xf32, #tpu.memory_space<vmem>>, %arg4: memref<8x512xf32, #tpu.memory_space<vmem>>) attributes {dimension_semantics = [], scalar_prefetch = 0 : i64, scratch_operands = 0 : i64, tpu.core_type = #tpu.core_type<tc>} {
    %c0 = arith.constant 0 : index
    %c0_0 = arith.constant 0 : index
    %0 = vector.load %arg1[%c0, %c0_0] : memref<32x40xf32, #tpu.memory_space<vmem>>, vector<32x40xf32>
    %c0_1 = arith.constant 0 : index
    %c0_2 = arith.constant 0 : index
    %1 = vector.load %arg0[%c0_1, %c0_2] : memref<40x512xf32, #tpu.memory_space<vmem>>, vector<40x512xf32>
    %cst = arith.constant dense<0.000000e+00> : vector<32x512xf32>
    %2 = tpu.matmul %0, %1, %cst {dimension_numbers = #tpu.dot_dimension_numbers<[1], [0], [0], [1], [0, 0, 1, 1], [], []>} : vector<32x40xf32>, vector<40x512xf32>, vector<32x512xf32> -> vector<32x512xf32>
    %cst_3 = arith.constant 0.000000e+00 : f32
    %3 = vector.broadcast %cst_3 : f32 to vector<32x512xf32>
    %4 = arith.maximumf %2, %3 : vector<32x512xf32>
    %c0_4 = arith.constant 0 : index
    %c0_5 = arith.constant 0 : index
    %5 = vector.load %arg2[%c0_4, %c0_5] : memref<8x32xf32, #tpu.memory_space<vmem>>, vector<8x32xf32>
    %cst_6 = arith.constant dense<0.000000e+00> : vector<8x512xf32>
    %6 = tpu.matmul %5, %4, %cst_6 {dimension_numbers = #tpu.dot_dimension_numbers<[1], [0], [0], [1], [0, 0, 1, 1], [], []>} : vector<8x32xf32>, vector<32x512xf32>, vector<8x512xf32> -> vector<8x512xf32>
    %c0_7 = arith.constant 0 : index
    %c0_8 = arith.constant 0 : index
    %7 = vector.load %arg3[%c0_7, %c0_8] : memref<8x1xf32, #tpu.memory_space<vmem>>, vector<8x1xf32>
    %8 = vector.broadcast %7 : vector<8x1xf32> to vector<8x512xf32>
    %9 = arith.addf %6, %8 : vector<8x512xf32>
    %c0_9 = arith.constant 0 : index
    %c0_10 = arith.constant 0 : index
    %10 = vector.load %arg4[%c0_9, %c0_10] : memref<8x512xf32, #tpu.memory_space<vmem>>, vector<8x512xf32>
    tpu.vector_store %arg4[%c0_9, %c0_10], %9 {strides = array<i32>} : memref<8x512xf32, #tpu.memory_space<vmem>>, vector<8x512xf32>,
    return
  }
}

</mosaic_0001>

<bundles_post_ra>
// kernel: squeeze.2
= control target key start
LH: loop header
LB: loop body
LE: loop exit
PB: predicated region body
PF: predicated region fallthrough
CT: control target
= control target key end

     0   :  { %s130_s0 = inlined_call_operand.vmem [shape: f32[512], index: 0, kind: input, shape index: {}]   ;;  %s131_s1 = inlined_call_operand.hbm [shape: f32[2,1,16,16], index: 1, kind: output, shape index: {}]  }
   0x1   :  { %v5_v0 = vld [vmem:[%s130_s0] sm:$0xf] }
   0x2   :  { %6 = vst [vmem:[#allocation2] sm:$0xf] %v5_v0 }
   0x3   :  { %2 = vsyncpa [#allocation1], 0  ;;  %s98_s0 = smov 112   ;;  %s99_s8 = smov 80   ;;  %vm8_vm0 = vcmask 130048  }
   0x4   :  { %s100_s9 = smov 48   ;;  %s101_s10 = smov 96  }
   0x5   :  { %s102_s11 = smov 64   ;;  %s103_s12 = smov 32  }
   0x6   :  { %s104_s13 = smov 16   ;;  %s105_s14 = smov [#allocation0]  }
   0x7   :  { %s55_s15 = sshll.u32 %s105_s14, 4  ;;  %s57_s1 = sshll.u32 %s131_s1, 4  ;;  %s56_s15 = int_to_ptr.vmem [resolvable:$true] %s55_s15  ;;  %s58_s1 = int_to_ptr.hbm [resolvable:$true] %s57_s1 }
   0x9   :  { %v10_v1 = vld [vmem:[#allocation2] sm:$0xf]  }
   0xa   :  { %v22_v2 = vld [vmem:[#allocation2] sm:$0xf]   ;;  %11 = vrot.lane.b32.xlu0 %v10_v1, %s98_s0 }
   0xb   :  { %23 = vrot.lane.b32.xlu1 %v22_v2, %s99_s8  ;;  %v34_v3 = vld [vmem:[#allocation2] sm:$0xf]  }
   0xc   :  { %35 = vrot.lane.b32.xlu2 %v34_v3, %s100_s9  ;;  %v16_v4 = vld [vmem:[#allocation2] sm:$0xf]  }
   0xd   :  { %v28_v5 = vld [vmem:[#allocation2] sm:$0xf]  }
   0xe   :  { %v40_v6 = vld [vmem:[#allocation2] sm:$0xf]  }
   0xf   :  { %v46_v7 = vld [vmem:[#allocation2] sm:$0xf]  }
  0x10   :  { %v7_v9 = vld [vmem:[#allocation2] sm:$0xf]  }
  0x11   :  { %9 = vst.msk [vmem:[#allocation0] ss:$8 sm:$0xf] %vm8_vm0, %v7_v9  }
  0x12   :  { %17 = vrot.lane.b32.xlu0 %v16_v4, %s101_s10 }
  0x13   :  { %29 = vrot.lane.b32.xlu1 %v28_v5, %s102_s11 }
  0x14   :  { %41 = vrot.lane.b32.xlu2 %v40_v6, %s103_s12 }
  0x1a   :  { %47 = vrot.lane.b32.xlu0 %v46_v7, %s104_s13 }
  0x66   :  { %v36_v8 = vpop.permute.xlu2 %35  }
  0x67   :  { %39 = vst.msk [vmem:[#allocation0 + $0x5] ss:$8 sm:$0xf] %vm8_vm0, %v36_v8  }
  0x6e   :  { %v42_v10 = vpop.permute.xlu2 %41  }
  0x6f   :  { %45 = vst.msk [vmem:[#allocation0 + $0x6] ss:$8 sm:$0xf] %vm8_vm0, %v42_v10  }
  0x7c   :  { %v12_v11 = vpop.permute.xlu0 %11  }
  0x7d   :  { %v24_v12 = vpop.permute.xlu1 %23   ;;  %15 = vst.msk [vmem:[#allocation0 + $0x1] ss:$8 sm:$0xf] %vm8_vm0, %v12_v11  }
  0x7e   :  { %27 = vst.msk [vmem:[#allocation0 + $0x3] ss:$8 sm:$0xf] %vm8_vm0, %v24_v12  }
  0x84   :  { %v18_v13 = vpop.permute.xlu0 %17  }
  0x85   :  { %v30_v14 = vpop.permute.xlu1 %29   ;;  %21 = vst.msk [vmem:[#allocation0 + $0x2] ss:$8 sm:$0xf] %vm8_vm0, %v18_v13  }
  0x86   :  { %33 = vst.msk [vmem:[#allocation0 + $0x4] ss:$8 sm:$0xf] %vm8_vm0, %v30_v14  }
  0x8c   :  { %v48_v15 = vpop.permute.xlu0 %47  }
  0x8d   :  { %51 = vst.msk [vmem:[#allocation0 + $0x7] ss:$8 sm:$0xf] %vm8_vm0, %v48_v15  }
  0x8e   :  { %60 = dma.vmem_to_hbm [thread:$0]  %s56_s15, 512, %s58_s1, [#allocation1]  }
  0x8f   :  { %96 = dma.done.wait [#allocation1], 512  }
  0x90   :  { %97 = vsyncadd [#allocation1], 4294966784 }
  0x91   :  { %63 = vsyncpa [#allocation1], 1 }

// kernel: base_agent_forward.1
= control target key start
LH: loop header
LB: loop body
LE: loop exit
PB: predicated region body
PF: predicated region fallthrough
CT: control target
= control target key end

     0   :  { %vm41_vm0 = vcmask 326656   ;;  %v307_v31 = vmov 0   ;;  %vm193_vm1 = vcmask 261120   ;;  %s439_s0 = inlined_call_operand.vmem [shape: f32[40,512], index: 0, kind: input, shape index: {}]   ;;  %s440_s1 = inlined_call_operand.vmem [shape: f32[32,40], index: 1, kind: input, shape index: {}]   ;;  %s441_s3 = inlined_call_operand.vmem [shape: f32[8,1], index: 3, kind: input, shape index: {}]   ;;  %s442_s2 = inlined_call_operand.vmem [shape: f32[8,32], index: 2, kind: input, shape index: {}]   ;;  %s443_s4 = inlined_call_operand.vmem [shape: f32[8,512], index: 4, kind: output, shape index: {}]  }
   0x1   :  { %v37_v0 = vld [vmem:[%s439_s0 + $0x80] sm:$0xff]  ;;  %v38_v1 = vld [vmem:[%s439_s0 + $0x88] sm:$0xff]  ;;  %v39_v2 = vld [vmem:[%s439_s0 + $0x90] sm:$0xff]  ;;  %306 = vset.pattern.permute.xlu0 %v307_v31 }
   0x2   :  { %65 = vmatpush.msra.mxu0 %v37_v0  ;;  %94 = vmatpush.msra.mxu1 %v38_v1  ;;  %v40_v3 = vld [vmem:[%s439_s0 + $0x98] sm:$0xff]  ;;  %v33_v4 = vld [vmem:[%s439_s0 + $0x60] sm:$0xff]  ;;  %v34_v5 = vld [vmem:[%s439_s0 + $0x68] sm:$0xff] }
   0x3   :  { %123 = vmatpush.msra.mxu2 %v39_v2  ;;  %152 = vmatpush.msra.mxu3 %v40_v3  ;;  %v35_v6 = vld [vmem:[%s439_s0 + $0x70] sm:$0xff]  ;;  %v36_v7 = vld [vmem:[%s439_s0 + $0x78] sm:$0xff]  ;;  %v29_v8 = vld [vmem:[%s439_s0 + $0x40] sm:$0xff] }
   0x4   :  { %66 = vmatpush.msra.mxu0 %v33_v4  ;;  %95 = vmatpush.msra.mxu1 %v34_v5  ;;  %v30_v9 = vld [vmem:[%s439_s0 + $0x48] sm:$0xff]  ;;  %v31_v10 = vld [vmem:[%s439_s0 + $0x50] sm:$0xff]  ;;  %v32_v11 = vld [vmem:[%s439_s0 + $0x58] sm:$0xff] }
   0x5   :  { %124 = vmatpush.msra.mxu2 %v35_v6  ;;  %153 = vmatpush.msra.mxu3 %v36_v7  ;;  %v25_v12 = vld [vmem:[%s439_s0 + $0x20] sm:$0xff]  ;;  %v26_v13 = vld [vmem:[%s439_s0 + $0x28] sm:$0xff]  ;;  %v27_v14 = vld [vmem:[%s439_s0 + $0x30] sm:$0xff] }
   0x6   :  { %67 = vmatpush.msra.mxu0 %v29_v8  ;;  %96 = vmatpush.msra.mxu1 %v30_v9  ;;  %v28_v15 = vld [vmem:[%s439_s0 + $0x38] sm:$0xff]  ;;  %v21_v16 = vld [vmem:[%s439_s0] sm:$0xff]  ;;  %v22_v17 = vld [vmem:[%s439_s0 + $0x8] sm:$0xff] }
   0x7   :  { %125 = vmatpush.msra.mxu2 %v31_v10  ;;  %154 = vmatpush.msra.mxu3 %v32_v11  ;;  %v23_v18 = vld [vmem:[%s439_s0 + $0x10] sm:$0xff]  ;;  %v24_v19 = vld [vmem:[%s439_s0 + $0x18] sm:$0xff]  ;;  %v17_v20 = vld [vmem:[%s440_s1] sm:$0xff] }
   0x8   :  { %68 = vmatpush.msra.mxu0 %v25_v12  ;;  %97 = vmatpush.msra.mxu1 %v26_v13  ;;  %v18_v21 = vld [vmem:[%s440_s1 + $0x8] sm:$0xff]  ;;  %v19_v22 = vld [vmem:[%s440_s1 + $0x10] sm:$0xff]  ;;  %v20_v23 = vld [vmem:[%s440_s1 + $0x18] sm:$0xff] }
   0x9   :  { %126 = vmatpush.msra.mxu2 %v27_v14  ;;  %155 = vmatpush.msra.mxu3 %v28_v15  ;;  %v187_v30 = vld [vmem:[%s441_s3] sm:$0xff] }
   0xa   :  { %69 = vmatpush.msra.mxu0 %v21_v16  ;;  %98 = vmatpush.msra.mxu1 %v22_v17  ;;  %v186_v54 = vld [vmem:[%s442_s2] sm:$0xff] }
   0xb   :  { %127 = vmatpush.msra.mxu2 %v23_v18  ;;  %156 = vmatpush.msra.mxu3 %v24_v19 }
   0xc   :  { %285 = vmatmul.msk.f32.vlgmr.msra.gmra.mxu0 %vm41_vm0, %v17_v20  ;;  %289 = vmatmul.msk.f32.vlgmr.msra.gmra.mxu1 %vm41_vm0, %v17_v20 }
   0xd   :  { %293 = vmatmul.msk.f32.vlgmr.msra.gmra.mxu2 %vm41_vm0, %v17_v20  ;;  %297 = vmatmul.msk.f32.vlgmr.msra.gmra.mxu3 %vm41_vm0, %v17_v20 }
   0xe   :  { %190 = vperm.xlu0 %306, %v187_v30  }
  0x14   :  { %286 = vmatmul.msk.f32.gmra.mxu0 %vm41_vm0, %v18_v21  ;;  %290 = vmatmul.msk.f32.gmra.mxu1 %vm41_vm0, %v18_v21 }
  0x15   :  { %294 = vmatmul.msk.f32.gmra.mxu2 %vm41_vm0, %v18_v21  ;;  %298 = vmatmul.msk.f32.gmra.mxu3 %vm41_vm0, %v18_v21 }
  0x1c   :  { %287 = vmatmul.msk.f32.gmra.mxu0 %vm41_vm0, %v19_v22  ;;  %291 = vmatmul.msk.f32.gmra.mxu1 %vm41_vm0, %v19_v22 }
  0x1d   :  { %295 = vmatmul.msk.f32.gmra.mxu2 %vm41_vm0, %v19_v22  ;;  %299 = vmatmul.msk.f32.gmra.mxu3 %vm41_vm0, %v19_v22 }
  0x24   :  { %288 = vmatmul.msk.f32.gmra.mxu0 %vm41_vm0, %v20_v23  ;;  %292 = vmatmul.msk.f32.gmra.mxu1 %vm41_vm0, %v20_v23 }
  0x25   :  { %296 = vmatmul.msk.f32.gmra.mxu2 %vm41_vm0, %v20_v23  ;;  %300 = vmatmul.msk.f32.gmra.mxu3 %vm41_vm0, %v20_v23 }
  0x80   :  { %v191_v59 = vpop.permute.xlu0 %190 }
  0x89   :  { %v71_v24 = vpop.f32.mrf.mxu0  ;;  %v100_v25 = vpop.f32.mrf.mxu1 }
  0x8a   :  { %v170_v46 = vmax.f32 %v71_v24, 0.0  ;;  %v171_v47 = vmax.f32 %v100_v25, 0.0 }
  0x90   :  { %v129_v26 = vpop.f32.mrf.mxu2  ;;  %v158_v27 = vpop.f32.mrf.mxu3 }
  0x91   :  { %v74_v28 = vpop.f32.mrf.mxu0  ;;  %v103_v29 = vpop.f32.mrf.mxu1  ;;  %v172_v57 = vmax.f32 %v129_v26, 0.0  ;;  %v173_v58 = vmax.f32 %v158_v27, 0.0 }
  0x92   :  { %v174_v44 = vmax.f32 %v74_v28, 0.0  ;;  %v175_v45 = vmax.f32 %v103_v29, 0.0 }
  0x98   :  { %v132_v32 = vpop.f32.mrf.mxu2  ;;  %v161_v33 = vpop.f32.mrf.mxu3 }
  0x99   :  { %v77_v34 = vpop.f32.mrf.mxu0  ;;  %v106_v35 = vpop.f32.mrf.mxu1  ;;  %v176_v55 = vmax.f32 %v132_v32, 0.0  ;;  %v177_v56 = vmax.f32 %v161_v33, 0.0 }
  0x9a   :  { %v178_v40 = vmax.f32 %v77_v34, 0.0  ;;  %v179_v41 = vmax.f32 %v106_v35, 0.0 }
  0xa0   :  { %v135_v36 = vpop.f32.mrf.mxu2  ;;  %v164_v37 = vpop.f32.mrf.mxu3 }
  0xa1   :  { %v80_v38 = vpop.f32.mrf.mxu0  ;;  %v109_v39 = vpop.f32.mrf.mxu1  ;;  %v180_v52 = vmax.f32 %v135_v36, 0.0  ;;  %v181_v53 = vmax.f32 %v164_v37, 0.0 }
  0xa2   :  { %v182_v42 = vmax.f32 %v80_v38, 0.0  ;;  %v183_v43 = vmax.f32 %v109_v39, 0.0 }
  0xa4   :  { %209 = vmatpush.msrb.mxu0 %v182_v42  ;;  %229 = vmatpush.msrb.mxu1 %v183_v43 }
  0xa6   :  { %210 = vmatpush.msrb.mxu0 %v178_v40  ;;  %230 = vmatpush.msrb.mxu1 %v179_v41 }
  0xa8   :  { %v138_v48 = vpop.f32.mrf.mxu2  ;;  %v167_v49 = vpop.f32.mrf.mxu3  ;;  %211 = vmatpush.msrb.mxu0 %v174_v44  ;;  %231 = vmatpush.msrb.mxu1 %v175_v45 }
  0xa9   :  { %v184_v50 = vmax.f32 %v138_v48, 0.0  ;;  %v185_v51 = vmax.f32 %v167_v49, 0.0 }
  0xaa   :  { %212 = vmatpush.msrb.mxu0 %v170_v46  ;;  %232 = vmatpush.msrb.mxu1 %v171_v47 }
  0xab   :  { %249 = vmatpush.msrb.mxu2 %v184_v50  ;;  %269 = vmatpush.msrb.mxu3 %v185_v51 }
  0xac   :  { %301 = vmatmul.msk.f32.vlgmr.msrb.gmra.mxu0 %vm193_vm1, %v186_v54  ;;  %302 = vmatmul.msk.f32.vlgmr.msrb.gmra.mxu1 %vm193_vm1, %v186_v54 }
  0xad   :  { %250 = vmatpush.msrb.mxu2 %v180_v52  ;;  %270 = vmatpush.msrb.mxu3 %v181_v53 }
  0xaf   :  { %251 = vmatpush.msrb.mxu2 %v176_v55  ;;  %271 = vmatpush.msrb.mxu3 %v177_v56 }
  0xb1   :  { %252 = vmatpush.msrb.mxu2 %v172_v57  ;;  %272 = vmatpush.msrb.mxu3 %v173_v58 }
  0xb2   :  { %303 = vmatmul.msk.f32.vlgmr.msrb.gmra.mxu2 %vm193_vm1, %v186_v54  ;;  %304 = vmatmul.msk.f32.vlgmr.msrb.gmra.mxu3 %vm193_vm1, %v186_v54 }
 0x129   :  { %v214_v60 = vpop.f32.mrf.mxu0  ;;  %v234_v61 = vpop.f32.mrf.mxu1 }
 0x12a   :  { %v215_v62 = vadd.f32 %v214_v60, %v191_v59  ;;  %v235_v63 = vadd.f32 %v234_v61, %v191_v59 }
 0x12c   :  { %277 = vst [vmem:[%s443_s4] sm:$0xff] %v215_v62 }
 0x12d   :  { %278 = vst [vmem:[%s443_s4 + $0x8] sm:$0xff] %v235_v63 }
 0x135   :  { %v254_v0 = vpop.f32.mrf.mxu2  ;;  %v274_v1 = vpop.f32.mrf.mxu3 }
 0x136   :  { %v255_v2 = vadd.f32 %v254_v0, %v191_v59  ;;  %v275_v3 = vadd.f32 %v274_v1, %v191_v59 }
 0x138   :  { %279 = vst [vmem:[%s443_s4 + $0x10] sm:$0xff] %v255_v2 }
 0x139   :  { %280 = vst [vmem:[%s443_s4 + $0x18] sm:$0xff] %v275_v3 }

</bundles_post_ra>
